<compile_context>
chip_gen: v5e
topology: v5e:2x2
jax: 0.10.0
libtpu: 0.0.40
codegen_flags: <defaults>
</compile_context>

<pallas_src>
import functools

import jax
import jax.numpy as jnp
from jax.experimental import pallas as pl
from jax.experimental.pallas import tpu as pltpu

HIDDEN = 128
LANE = 128


def actor_critic_kernel(x_ref, w1_ref, b1_ref, w2_ref, b2_ref, wh_ref, bh_ref,
                        seg_ref, out_ref, *, sc, mxu_dtype):
    """One grid step processes a (BM, state_dim) batch tile.

    out_ref is a lane-dense (BM, N_pad) slab:
      columns [0, sc)      per-head softmax probabilities (head-major packing)
      column  sc           value head
      columns (sc, N_pad)  zero padding (head weights/bias are zero-padded)
    """
    f32 = jnp.float32
    x = x_ref[...].astype(mxu_dtype)

    # ---- shared MLP: two MXU matmuls + VPU ReLU (bias/ReLU kept in f32) ----
    h = jnp.dot(x, w1_ref[...], preferred_element_type=f32) + b1_ref[...]
    h = jnp.maximum(h, 0.0)
    h = jnp.dot(h.astype(mxu_dtype), w2_ref[...], preferred_element_type=f32) + b2_ref[...]
    h = jnp.maximum(h, 0.0)

    # ---- all S load heads + value head: ONE fused lane-dense matmul ----
    full = jnp.dot(h.astype(mxu_dtype), wh_ref[...],
                   preferred_element_type=f32) + bh_ref[...]            # (BM, N_pad)

    # ---- vectorized per-head softmax over the whole slab ----
    col = jax.lax.broadcasted_iota(jnp.int32, full.shape, 1)
    is_logit = col < sc                                  # value/pad columns excluded
    masked = jnp.where(is_logit, full, -jnp.inf)
    # Row max over logit columns only (global across heads: mathematically identical
    # to a per-head max; could only underflow a head sitting >~88 below the global max).
    m = jnp.max(masked, axis=-1, keepdims=True)
    e = jnp.exp(masked - m)                              # exp(-inf)=0 on value/pad cols
    # Per-head denominators broadcast back to every column via one tiny (N_pad,N_pad)
    # matmul against the block-diagonal 0/1 segment-sum matrix (kept in f32).
    denom = jnp.dot(e, seg_ref[...], preferred_element_type=f32)
    denom = jnp.where(is_logit, denom, 1.0)
    probs = e * pl.reciprocal(denom, approx=True)        # EUP reciprocal: frees VALU

    # ---- single unmasked, full-width lane-dense store ----
    out_ref[...] = jnp.where(is_logit, probs, full)


def _batch_block(batch):
    """Batch tile: capped at 256 rows (near HBM roofline; keeps >=2 grid steps per
    v7x TensorCore for batch >= 1024, and a 256-row f32 tile is far under even
    v7x's 64 MiB VMEM). Small batches use a single 8-row-aligned tile."""
    if batch >= 256:
        return 256
    return max(8, -(-batch // 8) * 8)


def pack_params(params, mxu_dtype=jnp.bfloat16):
    """One-time (offline) packing:
      * fuse the S load heads + value head into one (HIDDEN, N_pad) lane-dense
        weight matrix (N_pad = next multiple of 128 covering S*C+1),
      * build the (N_pad, N_pad) block-diagonal segment-sum matrix used by the
        vectorized in-kernel softmax,
      * cast MXU operands to `mxu_dtype` (bf16 default; biases stay f32)."""
    w1, b1, w2, b2, wl, bl, wv, bv = params
    s, h, c = wl.shape
    sc = s * c
    n_pad = ((sc + 1 + LANE - 1) // LANE) * LANE

    wh = jnp.concatenate([jnp.transpose(wl, (1, 0, 2)).reshape(h, sc), wv], axis=1)
    wh = jnp.pad(wh, ((0, 0), (0, n_pad - sc - 1)))
    bh = jnp.concatenate([bl.reshape(1, sc), bv.reshape(1, 1)], axis=1)
    bh = jnp.pad(bh, ((0, 0), (0, n_pad - sc - 1)))

    ids = jnp.arange(n_pad)
    logit = ids < sc
    same_head = (ids[:, None] // c) == (ids[None, :] // c)
    seg = (same_head & logit[:, None] & logit[None, :]).astype(jnp.float32)

    packed = (w1.astype(mxu_dtype), b1.astype(jnp.float32),
              w2.astype(mxu_dtype), b2.astype(jnp.float32),
              wh.astype(mxu_dtype), bh.astype(jnp.float32),
              seg)
    return packed, (s, c, n_pad)


def actor_critic_forward(x, packed, dims):
    """Returns (load_probs (B, S, C), value (B,)) like the PyTorch module."""
    w1, b1, w2, b2, wh, bh, seg = packed
    server_num, container_num, n_pad = dims
    mxu_dtype = w1.dtype
    batch, state_dim = x.shape

    bm = _batch_block(batch)
    padded = pl.cdiv(batch, bm) * bm
    if padded != batch:               # pad instead of a giant single-tile fallback
        x = jnp.pad(x, ((0, padded - batch), (0, 0)))

    kernel = functools.partial(actor_critic_kernel,
                               sc=server_num * container_num, mxu_dtype=mxu_dtype)

    def weight_spec(arr):
        return pl.BlockSpec(arr.shape, lambda i: (0, 0))  # resident across grid steps

    slab = pl.pallas_call(
        kernel,
        grid=(padded // bm,),
        in_specs=[pl.BlockSpec((bm, state_dim), lambda i: (i, 0)),
                  weight_spec(w1), weight_spec(b1),
                  weight_spec(w2), weight_spec(b2),
                  weight_spec(wh), weight_spec(bh),
                  weight_spec(seg)],
        out_specs=pl.BlockSpec((bm, n_pad), lambda i: (i, 0)),
        out_shape=jax.ShapeDtypeStruct((padded, n_pad), jnp.float32),
        compiler_params=pltpu.CompilerParams(dimension_semantics=("parallel",)),
    )(x, w1, b1, w2, b2, wh, bh, seg)

    sc = server_num * container_num
    load_probs = slab[:batch, :sc].reshape(batch, server_num, container_num)
    value = slab[:batch, sc]
    return load_probs, value


def init_params(key, state_dim, server_num, container_num, hidden=HIDDEN):
    """Deterministic PyTorch-Linear-style uniform init."""
    def lin(k, fan_in, fan_out):
        bound = 1.0 / float(fan_in) ** 0.5
        kw, kb = jax.random.split(k)
        w = jax.random.uniform(kw, (fan_in, fan_out), jnp.float32, -bound, bound)
        b = jax.random.uniform(kb, (1, fan_out), jnp.float32, -bound, bound)
        return w, b

    keys = jax.random.split(key, 3 + server_num)
    w1, b1 = lin(keys[0], state_dim, hidden)
    w2, b2 = lin(keys[1], hidden, hidden)
    wv, bv = lin(keys[2], hidden, 1)
    wl_list, bl_list = [], []
    for s in range(server_num):
        w, b = lin(keys[3 + s], hidden, container_num)
        wl_list.append(w)
        bl_list.append(b[0])
    wl = jnp.stack(wl_list, axis=0)   # (S, hidden, C)
    bl = jnp.stack(bl_list, axis=0)   # (S, C)
    return w1, b1, w2, b2, wl, bl, wv, bv


def _reference_forward(x, params):
    """Plain-JAX reference used as a silent correctness check."""
    w1, b1, w2, b2, wl, bl, wv, bv = params
    h = jnp.maximum(x @ w1 + b1, 0.0)
    h = jnp.maximum(h @ w2 + b2, 0.0)
    logits = jnp.einsum("bh,shc->bsc", h, wl) + bl[None]   # (B, S, C)
    probs = jax.nn.softmax(logits, axis=-1)
    value = (h @ wv + bv)[:, 0]
    return probs, value


if __name__ == "__main__":
    key = jax.random.PRNGKey(0)
    batch, state_dim = 8, 32
    server_num, container_num = 4, 8

    kx, kp = jax.random.split(key)
    x = jax.random.normal(kx, (batch, state_dim), jnp.float32)
    params = init_params(kp, state_dim, server_num, container_num)
    ref_probs, ref_value = _reference_forward(x, params)

    # ---- default fast path: bf16 MXU operands, f32 accumulation/elementwise ----
    packed_bf16, dims = pack_params(params)
    probs_bf, value_bf = actor_critic_forward(x, packed_bf16, dims)
    jax.block_until_ready((probs_bf, value_bf))
    assert probs_bf.shape == (batch, server_num, container_num), probs_bf.shape
    assert value_bf.shape == (batch,), value_bf.shape
    assert jnp.allclose(probs_bf, ref_probs, atol=5e-2, rtol=5e-2)
    assert jnp.allclose(value_bf, ref_value, atol=5e-2, rtol=5e-2)

    # ---- exact path: f32 MXU operands (only the approx reciprocal differs) ----
    packed_f32, dims32 = pack_params(params, jnp.float32)
    probs32, value32 = actor_critic_forward(x, packed_f32, dims32)
    jax.block_until_ready((probs32, value32))
    assert jnp.allclose(probs32, ref_probs, atol=2e-3, rtol=2e-3)
    assert jnp.allclose(value32, ref_value, atol=1e-5, rtol=1e-5)

    # ---- non-divisible multi-tile batch: exercises padding + the 256-row tile ----
    batch2 = 300
    x2 = jax.random.normal(jax.random.PRNGKey(1), (batch2, state_dim), jnp.float32)
    ref_probs2, ref_value2 = _reference_forward(x2, params)
    probs2, value2 = actor_critic_forward(x2, packed_f32, dims32)
    jax.block_until_ready((probs2, value2))
    assert probs2.shape == (batch2, server_num, container_num), probs2.shape
    assert jnp.allclose(probs2, ref_probs2, atol=2e-3, rtol=2e-3)
    assert jnp.allclose(value2, ref_value2, atol=1e-5, rtol=1e-5)

    # TODO(synk): for tiny RL batches (B<=128) the call is launch-overhead bound;
    # amortize by batching env steps per pallas_call / scanning the rollout.
    print("KERNEL_OK")
</pallas_src>

<mosaic_0001>
module attributes {stable_mosaic.version = 11 : i64} {
  func.func @actor_critic_kernel(%arg0: i32, %arg1: memref<8x32xf32, #tpu.memory_space<vmem>>, %arg2: memref<32x128xbf16, #tpu.memory_space<vmem>>, %arg3: memref<1x128xf32, #tpu.memory_space<vmem>>, %arg4: memref<128x128xbf16, #tpu.memory_space<vmem>>, %arg5: memref<1x128xf32, #tpu.memory_space<vmem>>, %arg6: memref<128x128xbf16, #tpu.memory_space<vmem>>, %arg7: memref<1x128xf32, #tpu.memory_space<vmem>>, %arg8: memref<128x128xf32, #tpu.memory_space<vmem>>, %arg9: memref<8x128xf32, #tpu.memory_space<vmem>>) attributes {dimension_semantics = [#tpu.dimension_semantics<parallel>], iteration_bounds = array<i64: 1>, scalar_prefetch = 0 : i64, scratch_operands = 0 : i64, tpu.core_type = #tpu.core_type<tc>, window_params = [{transform_indices = @transform_0, window_bounds = array<i64: 8, 32>}, {pipeline_mode = #tpu.pipeline_mode<synchronous>, transform_indices = @transform_1, window_bounds = array<i64: 32, 128>}, {pipeline_mode = #tpu.pipeline_mode<synchronous>, transform_indices = @transform_2, window_bounds = array<i64: 1, 128>}, {pipeline_mode = #tpu.pipeline_mode<synchronous>, transform_indices = @transform_3, window_bounds = array<i64: 128, 128>}, {pipeline_mode = #tpu.pipeline_mode<synchronous>, transform_indices = @transform_4, window_bounds = array<i64: 1, 128>}, {pipeline_mode = #tpu.pipeline_mode<synchronous>, transform_indices = @transform_5, window_bounds = array<i64: 128, 128>}, {pipeline_mode = #tpu.pipeline_mode<synchronous>, transform_indices = @transform_6, window_bounds = array<i64: 1, 128>}, {pipeline_mode = #tpu.pipeline_mode<synchronous>, transform_indices = @transform_7, window_bounds = array<i64: 128, 128>}, {transform_indices = @transform_8, window_bounds = array<i64: 8, 128>}]} {
    %c0 = arith.constant 0 : index
    %c0_0 = arith.constant 0 : index
    %0 = vector.load %arg1[%c0, %c0_0] : memref<8x32xf32, #tpu.memory_space<vmem>>, vector<8x32xf32>
    %1 = arith.truncf %0 : vector<8x32xf32> to vector<8x32xbf16>
    %c0_1 = arith.constant 0 : index
    %c0_2 = arith.constant 0 : index
    %2 = vector.load %arg2[%c0_1, %c0_2] : memref<32x128xbf16, #tpu.memory_space<vmem>>, vector<32x128xbf16>
    %cst = arith.constant dense<0.000000e+00> : vector<8x128xf32>
    %3 = tpu.matmul %1, %2, %cst {dimension_numbers = #tpu.dot_dimension_numbers<[1], [0], [0], [1], [0, 0, 1, 1], [], []>} : vector<8x32xbf16>, vector<32x128xbf16>, vector<8x128xf32> -> vector<8x128xf32>
    %c0_3 = arith.constant 0 : index
    %c0_4 = arith.constant 0 : index
    %4 = vector.load %arg3[%c0_3, %c0_4] : memref<1x128xf32, #tpu.memory_space<vmem>>, vector<1x128xf32>
    %5 = vector.broadcast %4 : vector<1x128xf32> to vector<8x128xf32>
    %6 = arith.addf %3, %5 : vector<8x128xf32>
    %cst_5 = arith.constant 0.000000e+00 : f32
    %7 = vector.broadcast %cst_5 : f32 to vector<8x128xf32>
    %8 = arith.maximumf %6, %7 : vector<8x128xf32>
    %9 = arith.truncf %8 : vector<8x128xf32> to vector<8x128xbf16>
    %c0_6 = arith.constant 0 : index
    %c0_7 = arith.constant 0 : index
    %10 = vector.load %arg4[%c0_6, %c0_7] : memref<128x128xbf16, #tpu.memory_space<vmem>>, vector<128x128xbf16>
    %cst_8 = arith.constant dense<0.000000e+00> : vector<8x128xf32>
    %11 = tpu.matmul %9, %10, %cst_8 {dimension_numbers = #tpu.dot_dimension_numbers<[1], [0], [0], [1], [0, 0, 1, 1], [], []>} : vector<8x128xbf16>, vector<128x128xbf16>, vector<8x128xf32> -> vector<8x128xf32>
    %c0_9 = arith.constant 0 : index
    %c0_10 = arith.constant 0 : index
    %12 = vector.load %arg5[%c0_9, %c0_10] : memref<1x128xf32, #tpu.memory_space<vmem>>, vector<1x128xf32>
    %13 = vector.broadcast %12 : vector<1x128xf32> to vector<8x128xf32>
    %14 = arith.addf %11, %13 : vector<8x128xf32>
    %cst_11 = arith.constant 0.000000e+00 : f32
    %15 = vector.broadcast %cst_11 : f32 to vector<8x128xf32>
    %16 = arith.maximumf %14, %15 : vector<8x128xf32>
    %17 = arith.truncf %16 : vector<8x128xf32> to vector<8x128xbf16>
    %c0_12 = arith.constant 0 : index
    %c0_13 = arith.constant 0 : index
    %18 = vector.load %arg6[%c0_12, %c0_13] : memref<128x128xbf16, #tpu.memory_space<vmem>>, vector<128x128xbf16>
    %cst_14 = arith.constant dense<0.000000e+00> : vector<8x128xf32>
    %19 = tpu.matmul %17, %18, %cst_14 {dimension_numbers = #tpu.dot_dimension_numbers<[1], [0], [0], [1], [0, 0, 1, 1], [], []>} : vector<8x128xbf16>, vector<128x128xbf16>, vector<8x128xf32> -> vector<8x128xf32>
    %c0_15 = arith.constant 0 : index
    %c0_16 = arith.constant 0 : index
    %20 = vector.load %arg7[%c0_15, %c0_16] : memref<1x128xf32, #tpu.memory_space<vmem>>, vector<1x128xf32>
    %21 = vector.broadcast %20 : vector<1x128xf32> to vector<8x128xf32>
    %22 = arith.addf %19, %21 : vector<8x128xf32>
    %23 = tpu.iota {dimensions = array<i32: 1>} : vector<8x128xi32>
    %c32_i32 = arith.constant 32 : i32
    %24 = vector.broadcast %c32_i32 : i32 to vector<8x128xi32>
    %25 = arith.cmpi slt, %23, %24 : vector<8x128xi32>
    %cst_17 = arith.constant 0xFF800000 : f32
    %26 = vector.broadcast %cst_17 : f32 to vector<8x128xf32>
    %27 = arith.select %25, %22, %26 : vector<8x128xi1>, vector<8x128xf32>
    %cst_18 = arith.constant dense<0xFF800000> : vector<8xf32>
    %28 = vector.multi_reduction <maximumf>, %27, %cst_18 [1] : vector<8x128xf32> to vector<8xf32>
    %29 = vector.shape_cast %28 : vector<8xf32> to vector<8x1xf32>
    %30 = vector.broadcast %29 : vector<8x1xf32> to vector<8x128xf32>
    %31 = arith.subf %27, %30 : vector<8x128xf32>
    %32 = math.exp %31 : vector<8x128xf32>
    %c0_19 = arith.constant 0 : index
    %c0_20 = arith.constant 0 : index
    %33 = vector.load %arg8[%c0_19, %c0_20] : memref<128x128xf32, #tpu.memory_space<vmem>>, vector<128x128xf32>
    %cst_21 = arith.constant dense<0.000000e+00> : vector<8x128xf32>
    %34 = tpu.matmul %32, %33, %cst_21 {dimension_numbers = #tpu.dot_dimension_numbers<[1], [0], [0], [1], [0, 0, 1, 1], [], []>} : vector<8x128xf32>, vector<128x128xf32>, vector<8x128xf32> -> vector<8x128xf32>
    %cst_22 = arith.constant 1.000000e+00 : f32
    %35 = vector.broadcast %cst_22 : f32 to vector<8x128xf32>
    %36 = arith.select %25, %34, %35 : vector<8x128xi1>, vector<8x128xf32>
    %37 = tpu.reciprocal %36 {approx = true} : vector<8x128xf32> -> vector<8x128xf32>
    %38 = arith.mulf %32, %37 : vector<8x128xf32>
    %39 = arith.select %25, %38, %22 : vector<8x128xi1>, vector<8x128xf32>
    %c0_23 = arith.constant 0 : index
    %c0_24 = arith.constant 0 : index
    %40 = vector.load %arg9[%c0_23, %c0_24] : memref<8x128xf32, #tpu.memory_space<vmem>>, vector<8x128xf32>
    tpu.vector_store %arg9[%c0_23, %c0_24], %39 {strides = array<i32>} : memref<8x128xf32, #tpu.memory_space<vmem>>, vector<8x128xf32>,
    return
  }
  func.func @transform_0(%arg0: i32) -> (i32, i32) {
    %c0_i32 = arith.constant 0 : i32
    %c0_i32_0 = arith.constant 0 : i32
    return %arg0, %c0_i32 : i32, i32
  }
  func.func @transform_1(%arg0: i32) -> (i32, i32) {
    %c0_i32 = arith.constant 0 : i32
    %c0_i32_0 = arith.constant 0 : i32
    %c0_i32_1 = arith.constant 0 : i32
    return %c0_i32, %c0_i32_0 : i32, i32
  }
  func.func @transform_2(%arg0: i32) -> (i32, i32) {
    %c0_i32 = arith.constant 0 : i32
    %c0_i32_0 = arith.constant 0 : i32
    %c0_i32_1 = arith.constant 0 : i32
    return %c0_i32, %c0_i32_0 : i32, i32
  }
  func.func @transform_3(%arg0: i32) -> (i32, i32) {
    %c0_i32 = arith.constant 0 : i32
    %c0_i32_0 = arith.constant 0 : i32
    %c0_i32_1 = arith.constant 0 : i32
    return %c0_i32, %c0_i32_0 : i32, i32
  }
  func.func @transform_4(%arg0: i32) -> (i32, i32) {
    %c0_i32 = arith.constant 0 : i32
    %c0_i32_0 = arith.constant 0 : i32
    %c0_i32_1 = arith.constant 0 : i32
    return %c0_i32, %c0_i32_0 : i32, i32
  }
  func.func @transform_5(%arg0: i32) -> (i32, i32) {
    %c0_i32 = arith.constant 0 : i32
    %c0_i32_0 = arith.constant 0 : i32
    %c0_i32_1 = arith.constant 0 : i32
    return %c0_i32, %c0_i32_0 : i32, i32
  }
  func.func @transform_6(%arg0: i32) -> (i32, i32) {
    %c0_i32 = arith.constant 0 : i32
    %c0_i32_0 = arith.constant 0 : i32
    %c0_i32_1 = arith.constant 0 : i32
    return %c0_i32, %c0_i32_0 : i32, i32
  }
  func.func @transform_7(%arg0: i32) -> (i32, i32) {
    %c0_i32 = arith.constant 0 : i32
    %c0_i32_0 = arith.constant 0 : i32
    %c0_i32_1 = arith.constant 0 : i32
    return %c0_i32, %c0_i32_0 : i32, i32
  }
  func.func @transform_8(%arg0: i32) -> (i32, i32) {
    %c0_i32 = arith.constant 0 : i32
    %c0_i32_0 = arith.constant 0 : i32
    return %arg0, %c0_i32 : i32, i32
  }
}

</mosaic_0001>

<bundles_post_ra>
// kernel: tpu_custom_call.1
= control target key start
LH: loop header
LB: loop body
LE: loop exit
PB: predicated region body
PF: predicated region fallthrough
CT: control target
= control target key end

     0   :  { %13 = vsyncpa [#allocation3], 0  ;;  %s726_s0 = inlined_call_operand.hbm [shape: f32[8,32], index: 0, kind: input, shape index: {}]   ;;  %s727_s1 = inlined_call_operand.hbm [shape: bf16[32,128], index: 1, kind: input, shape index: {}]   ;;  %s728_s2 = inlined_call_operand.vmem [shape: f32[1,128], index: 2, kind: input, shape index: {}]   ;;  %s729_s3 = inlined_call_operand.hbm [shape: bf16[128,128], index: 3, kind: input, shape index: {}]   ;;  %s730_s4 = inlined_call_operand.vmem [shape: f32[1,128], index: 4, kind: input, shape index: {}]   ;;  %s731_s5 = inlined_call_operand.hbm [shape: bf16[128,128], index: 5, kind: input, shape index: {}]   ;;  %s732_s6 = inlined_call_operand.vmem [shape: f32[1,128], index: 6, kind: input, shape index: {}]   ;;  %s733_s7 = inlined_call_operand.hbm [shape: f32[128,128], index: 7, kind: input, shape index: {}]   ;;  %s734_s8 = inlined_call_operand.hbm [shape: f32[8,128], index: 8, kind: output, shape index: {}]  }
   0x1   :  { %14 = vsyncpa [#allocation6], 0 }
   0x2   :  { %15 = vsyncpa [#allocation9], 0  ;;  %s32_s29 = sshll.u32 %s727_s1, 4  ;;  %s33_s29 = int_to_ptr.hbm [resolvable:$true] %s32_s29 }
   0x3   :  { %16 = vsyncpa [#allocation4], 0  ;;  %s641_s30 = smov [#allocation5]   ;;  %s62_s12 = sshll.u32 %s731_s5, 4  ;;  %s63_s12 = int_to_ptr.hbm [resolvable:$true] %s62_s12 }
   0x4   :  { %s34_s9 = sshll.u32 %s641_s30, 4  ;;  %s642_s13 = smov 64   ;;  %s35_s9 = int_to_ptr.vmem [resolvable:$true] %s34_s9 }
   0x5   :  { %s643_s14 = smov 4   ;;  %s644_s15 = smov [#allocation8]  }
   0x6   :  { %40 = dma.hbm_to_vmem [thread:$0]  %s33_s29, 256, %s35_s9, [#allocation6], %s642_s13, %s642_s13, %s643_s14  }
   0x7   :  { %s64_s16 = sshll.u32 %s644_s15, 4  ;;  %s22_s19 = sshll.u32 %s726_s0, 4  ;;  %s65_s16 = int_to_ptr.vmem [resolvable:$true] %s64_s16  ;;  %s23_s19 = int_to_ptr.hbm [resolvable:$true] %s22_s19 }
   0x8   :  { %70 = dma.hbm_to_vmem [thread:$0]  %s63_s12, 1024, %s65_s16, [#allocation9], %s642_s13, %s642_s13, %s643_s14  }
   0x9   :  { %s47_s21 = sshll.u32 %s729_s3, 4  ;;  %s645_s22 = smov [#allocation2]   ;;  %s48_s21 = int_to_ptr.hbm [resolvable:$true] %s47_s21 }
   0xa   :  { %s24_s23 = sshll.u32 %s645_s22, 4  ;;  %s646_s5 = smov [#allocation7]   ;;  %s25_s23 = int_to_ptr.vmem [resolvable:$true] %s24_s23 }
   0xb   :  { %27 = dma.hbm_to_vmem [thread:$0]  %s23_s19, 128, %s25_s23, [#allocation3]  }
   0xc   :  { %s49_s24 = sshll.u32 %s646_s5, 4  ;;  %s77_s27 = sshll.u32 %s733_s7, 4  ;;  %s50_s24 = int_to_ptr.vmem [resolvable:$true] %s49_s24  ;;  %s78_s27 = int_to_ptr.hbm [resolvable:$true] %s77_s27 }
   0xd   :  { %55 = dma.hbm_to_vmem [thread:$0]  %s48_s21, 1024, %s50_s24, [#allocation6], %s642_s13, %s642_s13, %s643_s14  }
   0xe   :  { %s647_s0 = smov [#allocation10]   ;;  %s648_s29 = smov 128  }
   0xf   :  { %s79_s28 = sshll.u32 %s647_s0, 4  ;;  %s649_s30 = smov 8   ;;  %s80_s28 = int_to_ptr.vmem [resolvable:$true] %s79_s28 }
  0x10   :  { %85 = dma.hbm_to_vmem [thread:$0]  %s78_s27, 2048, %s80_s28, [#allocation9], %s648_s29, %s648_s29, %s649_s30  }
  0x11   :  { %633 = dma.done.wait [#allocation3], 128  }
  0x12   :  { %634 = vsyncadd [#allocation3], 4294967168 }
  0x13   :  { %635 = dma.done.wait [#allocation6], 1280  }
  0x14   :  { %636 = vsyncadd [#allocation6], 4294966016 }
  0x15   :  { %637 = dma.done.wait [#allocation9], 3072  }
  0x16   :  { %638 = vsyncadd [#allocation9], 4294964224  ;;  %v455_v0 = vld [vmem:[#allocation5 + $0x8] sm:$0xff]  ;;  %v454_v2 = vld [vmem:[#allocation5] sm:$0xff]  ;;  %vm129_vm0 = vcmask 261120   ;;  %v312_v41 = vlaneseq  ;;  %s369_s14 = sshll.u32 %s734_s8, 4  ;;  %s370_s14 = int_to_ptr.hbm [resolvable:$true] %s369_s14 }
  0x17   :  { %v463_v1 = vld [vmem:[#allocation7 + $0x38] sm:$0xff]  ;;  %139 = vmatpush.bf16.msra.mxu0 %v455_v0  ;;  %v107_v3 = vld [vmem:[#allocation2] sm:$0xff]  ;;  %v462_v4 = vld [vmem:[#allocation7 + $0x30] sm:$0xff] }
  0x18   :  { %216 = vmatpush.bf16.msra.mxu1 %v463_v1  ;;  %v108_v5 = vpack.c.bf16 %v107_v3, %v107_v3  ;;  %v461_v6 = vld [vmem:[#allocation7 + $0x28] sm:$0xff]  ;;  %v460_v7 = vld [vmem:[#allocation7 + $0x20] sm:$0xff]  ;;  %v459_v8 = vld [vmem:[#allocation7 + $0x18] sm:$0xff]  ;;  %v313_v43 = vand.u32 127, %v312_v41 }
  0x19   :  { %v458_v9 = vld [vmem:[#allocation7 + $0x10] sm:$0xff]  ;;  %v457_v10 = vld [vmem:[#allocation7 + $0x8] sm:$0xff]  ;;  %v456_v11 = vld [vmem:[#allocation7] sm:$0xff] }
  0x1a   :  { %v471_v12 = vld [vmem:[#allocation8 + $0x38] sm:$0xff]  ;;  %v470_v13 = vld [vmem:[#allocation8 + $0x30] sm:$0xff]  ;;  %v469_v14 = vld [vmem:[#allocation8 + $0x28] sm:$0xff]  ;;  %vm314_vm1 = vcmp.lt.s32.totalorder %v313_v43, 32 }
  0x1b   :  { %140 = vmatpush.bf16.msra.mxu0 %v454_v2  ;;  %299 = vmatpush.bf16.msra.mxu2 %v471_v12  ;;  %v468_v15 = vld [vmem:[#allocation8 + $0x20] sm:$0xff]  ;;  %v467_v16 = vld [vmem:[#allocation8 + $0x18] sm:$0xff]  ;;  %v466_v17 = vld [vmem:[#allocation8 + $0x10] sm:$0xff] }
  0x1c   :  { %217 = vmatpush.bf16.msra.mxu1 %v462_v4  ;;  %v482_v18 = vld [vmem:[%s728_s2] ss:$0 sm:$0xff]  ;;  %v464_v25 = vld [vmem:[#allocation8] sm:$0xff]  ;;  %v336_v32 = vld [vmem:[#allocation10 + $0x78] sm:$0xff] }
  0x1d   :  { %v465_v24 = vld [vmem:[#allocation8 + $0x8] sm:$0xff]  ;;  %v335_v33 = vld [vmem:[#allocation10 + $0x70] sm:$0xff]  ;;  %337 = vmatpush.msra.mxu3 %v336_v32  ;;  %v333_v35 = vld [vmem:[#allocation10 + $0x60] sm:$0xff] }
  0x1e   :  { %389 = vmatmul.msk.bf16.vlgmr.msra.gmra.mxu0 %vm129_vm0, %v108_v5  ;;  %v483_v26 = vld [vmem:[%s730_s4] ss:$0 sm:$0xff]  ;;  %v332_v36 = vld [vmem:[#allocation10 + $0x58] sm:$0xff]  ;;  %v331_v37 = vld [vmem:[#allocation10 + $0x50] sm:$0xff] }
  0x1f   :  { %300 = vmatpush.bf16.msra.mxu2 %v470_v13  ;;  %v334_v34 = vld [vmem:[#allocation10 + $0x68] sm:$0xff]  ;;  %338 = vmatpush.msra.mxu3 %v335_v33  ;;  %v329_v39 = vld [vmem:[#allocation10 + $0x40] sm:$0xff]  ;;  %v328_v40 = vld [vmem:[#allocation10 + $0x38] sm:$0xff] }
  0x20   :  { %218 = vmatpush.bf16.msra.mxu1 %v461_v6  ;;  %v330_v38 = vld [vmem:[#allocation10 + $0x48] sm:$0xff]  ;;  %v327_v42 = vld [vmem:[#allocation10 + $0x30] sm:$0xff]  ;;  %v325_v50 = vld [vmem:[#allocation10 + $0x20] sm:$0xff] }
  0x21   :  { %339 = vmatpush.msra.mxu3 %v334_v34  ;;  %v484_v44 = vld [vmem:[%s732_s6] ss:$0 sm:$0xff]  ;;  %v324_v51 = vld [vmem:[#allocation10 + $0x18] sm:$0xff]  ;;  %v323_v52 = vld [vmem:[#allocation10 + $0x10] sm:$0xff]  ;;  %s650_s6 = smov [#allocation11]  }
  0x22   :  { %v326_v49 = vld [vmem:[#allocation10 + $0x28] sm:$0xff]  ;;  %v321_v54 = vld [vmem:[#allocation10] sm:$0xff]  ;;  %s367_s11 = sshll.u32 %s650_s6, 4  ;;  %s368_s11 = int_to_ptr.vmem [resolvable:$true] %s367_s11 }
  0x23   :  { %301 = vmatpush.bf16.msra.mxu2 %v469_v14  ;;  %340 = vmatpush.msra.mxu3 %v333_v35  ;;  %v322_v53 = vld [vmem:[#allocation10 + $0x8] sm:$0xff] }
  0x24   :  { %219 = vmatpush.bf16.msra.mxu1 %v460_v7 }
  0x25   :  { %341 = vmatpush.msra.mxu3 %v332_v36 }
  0x27   :  { %302 = vmatpush.bf16.msra.mxu2 %v468_v15  ;;  %342 = vmatpush.msra.mxu3 %v331_v37 }
  0x28   :  { %220 = vmatpush.bf16.msra.mxu1 %v459_v8 }
  0x29   :  { %343 = vmatpush.msra.mxu3 %v330_v38 }
  0x2b   :  { %303 = vmatpush.bf16.msra.mxu2 %v467_v16  ;;  %344 = vmatpush.msra.mxu3 %v329_v39 }
  0x2c   :  { %221 = vmatpush.bf16.msra.mxu1 %v458_v9 }
  0x2d   :  { %345 = vmatpush.msra.mxu3 %v328_v40 }
  0x2f   :  { %304 = vmatpush.bf16.msra.mxu2 %v466_v17  ;;  %346 = vmatpush.msra.mxu3 %v327_v42 }
  0x30   :  { %222 = vmatpush.bf16.msra.mxu1 %v457_v10 }
  0x31   :  { %347 = vmatpush.msra.mxu3 %v326_v49 }
  0x33   :  { %305 = vmatpush.bf16.msra.mxu2 %v465_v24  ;;  %348 = vmatpush.msra.mxu3 %v325_v50 }
  0x34   :  { %223 = vmatpush.bf16.msra.mxu1 %v456_v11 }
  0x35   :  { %349 = vmatpush.msra.mxu3 %v324_v51 }
  0x37   :  { %306 = vmatpush.bf16.msra.mxu2 %v464_v25  ;;  %350 = vmatpush.msra.mxu3 %v323_v52 }
  0x39   :  { %351 = vmatpush.msra.mxu3 %v322_v53 }
  0x3b   :  { %352 = vmatpush.msra.mxu3 %v321_v54 }
  0x9b   :  { %v142_v19 = vpop.f32.mrf.mxu0 }
  0x9c   :  { %v143_v20 = vadd.f32 %v482_v18, %v142_v19 }
  0x9e   :  { %v146_v21 = vmax.f32 %v143_v20, 0.0 }
  0xa0   :  { %v147_v22 = vpack.c.bf16 %v146_v21, %v146_v21 }
  0xa2   :  { %224 = vmatmul.bf16.vlgmr.msra.gmra.mxu1 %v147_v22 }
  0xa3   :  { %v144_v23 = vpop.f32.mrf.mxu0 }
 0x11f   :  { %v225_v27 = vpop.f32.mrf.mxu1 }
 0x120   :  { %v226_v28 = vadd.f32 %v483_v26, %v225_v27 }
 0x122   :  { %v229_v29 = vmax.f32 %v226_v28, 0.0 }
 0x124   :  { %v230_v30 = vpack.c.bf16 %v229_v29, %v229_v29 }
 0x126   :  { %307 = vmatmul.bf16.vlgmr.msra.gmra.mxu2 %v230_v30 }
 0x127   :  { %v227_v31 = vpop.f32.mrf.mxu1 }
 0x1a9   :  { %v308_v45 = vpop.f32.mrf.mxu2 }
 0x1aa   :  { %v309_v46 = vadd.f32 %v484_v44, %v308_v45 }
 0x1ac   :  { %v315_v47 = vsel %vm314_vm1, %v309_v46, -inf }
 0x1ad   :  { %316 = vmax.xlane.f32.xlu0 %v315_v47 }
 0x1b1   :  { %v310_v48 = vpop.f32.mrf.mxu2 }
 0x220   :  { %v317_v55 = vpop.xlane.xlu0 %316 }
 0x221   :  { %v318_v56 = vsub.f32 %v315_v47, %v317_v55 }
 0x223   :  { %v319_v57 = vmul.f32 1.442695, %v318_v56 }
 0x225   :  { %485 = vpow2.f32 %v319_v57 }
 0x22b   :  { %v486_v58 = vpop.eup %485 }
 0x22c   :  { %353 = vmatmul.f32.vlgmr.msra.gmra.mxu3 %v486_v58 }
 0x2af   :  { %v354_v59 = vpop.f32.mrf.mxu3 }
 0x2b0   :  { %v357_v60 = vsel %vm314_vm1, %v354_v59, 1.0 }
 0x2b1   :  { %487 = vrcp.f32 %v357_v60 }
 0x2b7   :  { %v488_v61 = vpop.eup %487 }
 0x2b8   :  { %v359_v62 = vmul.f32 %v488_v61, %v486_v58 }
 0x2ba   :  { %v360_v63 = vsel %vm314_vm1, %v359_v62, %v309_v46 }
 0x2bb   :  { %361 = vst [vmem:[#allocation11] sm:$0xff] %v360_v63 }
 0x2bc   :  { %372 = dma.vmem_to_hbm [thread:$0]  %s368_s11, 128, %s370_s14, [#allocation4]  }
 0x2bd   :  { %639 = dma.done.wait [#allocation4], 128  }
 0x2be   :  { %640 = vsyncadd [#allocation4], 4294967168 }
 0x2bf   :  { %377 = vsyncpa [#allocation3], 1 }
 0x2c0   :  { %378 = vsyncpa [#allocation6], 1 }
 0x2c1   :  { %379 = vsyncpa [#allocation9], 1 }
 0x2c2   :  { %380 = vsyncpa [#allocation4], 1 }

</bundles_post_ra>
